<compile_context>
chip_gen: v5e
topology: v5e:2x2
jax: 0.10.0
libtpu: 0.0.40
codegen_flags: <defaults>
</compile_context>

<pallas_src>
import functools

import jax
import jax.numpy as jnp
from jax import lax
from jax.experimental import pallas as pl
from jax.experimental.pallas import tpu as pltpu


def mha_kernel(x_ref, wqkv_ref, wp_ref, bp_ref, o_ref, *, num_heads, head_size):
    H, hs = num_heads, head_size
    T = x_ref.shape[0]

    # Fused QKV projection: one wide bf16 MXU matmul, f32 accumulation.
    xb = x_ref[...].astype(jnp.bfloat16)                                  # (T, C)
    qkv = jnp.dot(xb, wqkv_ref[...],
                  preferred_element_type=jnp.float32)                     # (T, 128)
    qkv = qkv.astype(jnp.bfloat16)       # cast once; every attention matmul is bf16

    # Head-major (H, T, hs) slabs.  These static lane extracts are the only
    # relayout in the kernel — no per-head transposes, matmuls or concatenates.
    q3 = jnp.stack([qkv[:, h * hs:(h + 1) * hs] for h in range(H)], axis=0)
    k3 = jnp.stack([qkv[:, (H + h) * hs:(H + h + 1) * hs] for h in range(H)], axis=0)
    v3 = jnp.stack([qkv[:, (2 * H + h) * hs:(2 * H + h + 1) * hs] for h in range(H)],
                   axis=0)

    # Head-batched scores; 1/sqrt(head_size) is already folded into W_q.
    s = jnp.einsum('htd,hsd->hts', q3, k3,
                   preferred_element_type=jnp.float32)                    # (H, T, T)

    # Causal mask: finite negative instead of -inf (diagonal is always unmasked).
    row = lax.broadcasted_iota(jnp.int32, (T, T), 0)
    col = lax.broadcasted_iota(jnp.int32, (T, T), 1)
    s = jnp.where((col <= row)[None], s, jnp.float32(-1e30))

    # Numerically-stable softmax in f32; the reciprocal goes to the EUP slot.
    s = s - jnp.max(s, axis=-1, keepdims=True)
    e = jnp.exp(s)
    p = e * pl.reciprocal(jnp.sum(e, axis=-1, keepdims=True), approx=True)
    # TODO(synk): nn.Dropout(0.2) on attention weights is eval-mode identity.

    o3 = jnp.einsum('hts,hsd->htd', p.astype(jnp.bfloat16), v3,
                    preferred_element_type=jnp.float32)                   # (H, T, hs)

    # concat(heads) @ Wproj  ==  head-batched projection, summed over heads.
    proj = jnp.einsum('htd,hdn->htn', o3.astype(jnp.bfloat16), wp_ref[...],
                      preferred_element_type=jnp.float32)                 # (H, T, 128)
    out = jnp.sum(proj, axis=0) + bp_ref[...]                             # (T, 128)
    # TODO(synk): output nn.Dropout(0.2) is eval-mode identity.
    o_ref[...] = out                                                      # full-lane store


def multi_head_attention(x, wq, wk, wv, wproj, bproj):
    """x: (B,T,C) f32; wq/wk/wv: (H,C,hs); wproj: (H*hs, n_emb); bproj: (1, n_emb)."""
    B, T, C = x.shape
    H, _, hs = wq.shape
    n_emb = wproj.shape[-1]
    n_pad = max(128, ((n_emb + 127) // 128) * 128)
    qkv_pad = max(128, ((3 * H * hs + 127) // 128) * 128)

    # One-time parameter layout plumbing (outside the kernel hot path).
    def stack(w):  # (H, C, hs) -> (C, H*hs); head h occupies columns [h*hs, (h+1)*hs)
        return jnp.transpose(w, (1, 0, 2)).reshape(C, H * hs)

    scale = jnp.float32(hs ** -0.5)
    wqkv = jnp.concatenate([stack(wq) * scale, stack(wk), stack(wv)], axis=1)
    wqkv = jnp.zeros((C, qkv_pad), jnp.float32).at[:, :3 * H * hs].set(wqkv)
    wqkv = wqkv.astype(jnp.bfloat16)                                     # (C, 128)

    # Projection weight as (H, hs, n_pad): batched per-head projection + sum over
    # heads is exactly concat(heads) @ Wproj.
    wp3 = jnp.zeros((H, hs, n_pad), jnp.float32).at[:, :, :n_emb].set(
        wproj.astype(jnp.float32).reshape(H, hs, n_emb))
    wp3 = wp3.astype(jnp.bfloat16)
    bp_pad = jnp.zeros((1, n_pad), jnp.float32).at[:, :n_emb].set(
        bproj.reshape(1, n_emb).astype(jnp.float32))

    kernel = functools.partial(mha_kernel, num_heads=H, head_size=hs)

    out = pl.pallas_call(
        kernel,
        out_shape=jax.ShapeDtypeStruct((B, T, n_pad), jnp.float32),
        grid_spec=pltpu.PrefetchScalarGridSpec(
            num_scalar_prefetch=0,
            grid=(B,),   # parallel axis: feeds both v7x TCs; small serial cost on v5e/v6e
            in_specs=[
                pl.BlockSpec((pl.Squeezed(), T, C), lambda b: (b, 0, 0)),    # x
                pl.BlockSpec((C, qkv_pad), lambda b: (0, 0)),                # Wqkv (resident)
                pl.BlockSpec((H, hs, n_pad), lambda b: (0, 0, 0)),           # Wproj (resident)
                pl.BlockSpec((1, n_pad), lambda b: (0, 0)),                  # bias (resident)
            ],
            out_specs=pl.BlockSpec((pl.Squeezed(), T, n_pad), lambda b: (b, 0, 0)),
        ),
        compiler_params=pltpu.CompilerParams(
            dimension_semantics=("parallel",)),
    )(x, wqkv, wp3, bp_pad)

    # Consumers that can accept the padded (B, T, 128) slab should skip this slice.
    return out[:, :, :n_emb]


if __name__ == "__main__":
    # Shapes implied by the module: Head hardcodes its q/k/v input dim to 384,
    # and num_heads * head_size must equal n_emb for the final projection.
    B, T = 2, 8                    # batch, block_size (seq length)
    C = 384                        # Head.n_emb is hardcoded to 384
    num_heads, head_size = 4, 8
    n_emb = num_heads * head_size  # 32 -> proj: Linear(32, 32)

    key = jax.random.PRNGKey(0)
    ks = jax.random.split(key, 6)

    bound_qkv = 1.0 / (C ** 0.5)
    wq = jax.random.uniform(ks[0], (num_heads, C, head_size), jnp.float32,
                            -bound_qkv, bound_qkv)
    wk = jax.random.uniform(ks[1], (num_heads, C, head_size), jnp.float32,
                            -bound_qkv, bound_qkv)
    wv = jax.random.uniform(ks[2], (num_heads, C, head_size), jnp.float32,
                            -bound_qkv, bound_qkv)

    bound_p = 1.0 / (n_emb ** 0.5)
    wproj = jax.random.uniform(ks[3], (n_emb, n_emb), jnp.float32,
                               -bound_p, bound_p)
    bproj = jax.random.uniform(ks[4], (1, n_emb), jnp.float32,
                               -bound_p, bound_p)

    x = jax.random.normal(ks[5], (B, T, C), jnp.float32)

    out = multi_head_attention(x, wq, wk, wv, wproj, bproj)
    out = jax.block_until_ready(out)

    # pure-JAX f32 reference (eval mode: dropout = identity)
    def reference(x):
        heads = []
        mask = jnp.tril(jnp.ones((T, T), jnp.float32))
        for h in range(num_heads):
            q = x @ wq[h]
            k = x @ wk[h]
            v = x @ wv[h]
            wei = (q @ jnp.swapaxes(k, -2, -1)) * (head_size ** -0.5)
            wei = jnp.where(mask == 0, -jnp.inf, wei)
            wei = jax.nn.softmax(wei, axis=-1)
            heads.append(wei @ v)
        cat = jnp.concatenate(heads, axis=-1)
        return cat @ wproj + bproj

    expected = reference(x)
    assert out.shape == (B, T, n_emb)
    # bf16 operands on every matmul + approximate reciprocal shift results at the
    # ~1e-2 level relative to the f32 reference; tolerance set accordingly.
    assert jnp.allclose(out, expected, atol=3e-2, rtol=2e-2), \
        f"max err {jnp.max(jnp.abs(out - expected))}"

    print("KERNEL_OK")
</pallas_src>

<mosaic_0001>
module attributes {stable_mosaic.version = 11 : i64} {
  func.func @mha_kernel(%arg0: i32, %arg1: memref<1x8x384xf32, #tpu.memory_space<vmem>>, %arg2: memref<384x128xbf16, #tpu.memory_space<vmem>>, %arg3: memref<4x8x128xbf16, #tpu.memory_space<vmem>>, %arg4: memref<1x128xf32, #tpu.memory_space<vmem>>, %arg5: memref<1x8x128xf32, #tpu.memory_space<vmem>>) attributes {dimension_semantics = [#tpu.dimension_semantics<parallel>], iteration_bounds = array<i64: 2>, scalar_prefetch = 0 : i64, scratch_operands = 0 : i64, tpu.core_type = #tpu.core_type<tc>, window_params = [{transform_indices = @transform_0, window_bounds = array<i64: 1, 8, 384>}, {pipeline_mode = #tpu.pipeline_mode<synchronous>, transform_indices = @transform_1, window_bounds = array<i64: 384, 128>}, {pipeline_mode = #tpu.pipeline_mode<synchronous>, transform_indices = @transform_2, window_bounds = array<i64: 4, 8, 128>}, {pipeline_mode = #tpu.pipeline_mode<synchronous>, transform_indices = @transform_3, window_bounds = array<i64: 1, 128>}, {transform_indices = @transform_4, window_bounds = array<i64: 1, 8, 128>}]} {
    %c0 = arith.constant 0 : index
    %c0_0 = arith.constant 0 : index
    %c0_1 = arith.constant 0 : index
    %0 = vector.load %arg1[%c0, %c0_0, %c0_1] : memref<1x8x384xf32, #tpu.memory_space<vmem>>, vector<1x8x384xf32>
    %1 = vector.shape_cast %0 : vector<1x8x384xf32> to vector<8x384xf32>
    %2 = arith.truncf %1 : vector<8x384xf32> to vector<8x384xbf16>
    %c0_2 = arith.constant 0 : index
    %c0_3 = arith.constant 0 : index
    %3 = vector.load %arg2[%c0_2, %c0_3] : memref<384x128xbf16, #tpu.memory_space<vmem>>, vector<384x128xbf16>
    %cst = arith.constant dense<0.000000e+00> : vector<8x128xf32>
    %4 = tpu.matmul %2, %3, %cst {dimension_numbers = #tpu.dot_dimension_numbers<[1], [0], [0], [1], [0, 0, 1, 1], [], []>} : vector<8x384xbf16>, vector<384x128xbf16>, vector<8x128xf32> -> vector<8x128xf32>
    %5 = arith.truncf %4 : vector<8x128xf32> to vector<8x128xbf16>
    %6 = vector.extract_strided_slice %5 {offsets = [0, 0], sizes = [8, 8], strides = [1, 1]} : vector<8x128xbf16> to vector<8x8xbf16>
    %7 = vector.extract_strided_slice %5 {offsets = [0, 8], sizes = [8, 8], strides = [1, 1]} : vector<8x128xbf16> to vector<8x8xbf16>
    %8 = vector.extract_strided_slice %5 {offsets = [0, 16], sizes = [8, 8], strides = [1, 1]} : vector<8x128xbf16> to vector<8x8xbf16>
    %9 = vector.extract_strided_slice %5 {offsets = [0, 24], sizes = [8, 8], strides = [1, 1]} : vector<8x128xbf16> to vector<8x8xbf16>
    %10 = vector.shape_cast %6 : vector<8x8xbf16> to vector<1x8x8xbf16>
    %11 = vector.shape_cast %7 : vector<8x8xbf16> to vector<1x8x8xbf16>
    %12 = vector.shape_cast %8 : vector<8x8xbf16> to vector<1x8x8xbf16>
    %13 = vector.shape_cast %9 : vector<8x8xbf16> to vector<1x8x8xbf16>
    %14 = tpu.concatenate %10, %11, %12, %13 in 0 : vector<1x8x8xbf16>, vector<1x8x8xbf16>, vector<1x8x8xbf16>, vector<1x8x8xbf16> -> vector<4x8x8xbf16>
    %15 = vector.extract_strided_slice %5 {offsets = [0, 32], sizes = [8, 8], strides = [1, 1]} : vector<8x128xbf16> to vector<8x8xbf16>
    %16 = vector.extract_strided_slice %5 {offsets = [0, 40], sizes = [8, 8], strides = [1, 1]} : vector<8x128xbf16> to vector<8x8xbf16>
    %17 = vector.extract_strided_slice %5 {offsets = [0, 48], sizes = [8, 8], strides = [1, 1]} : vector<8x128xbf16> to vector<8x8xbf16>
    %18 = vector.extract_strided_slice %5 {offsets = [0, 56], sizes = [8, 8], strides = [1, 1]} : vector<8x128xbf16> to vector<8x8xbf16>
    %19 = vector.shape_cast %15 : vector<8x8xbf16> to vector<1x8x8xbf16>
    %20 = vector.shape_cast %16 : vector<8x8xbf16> to vector<1x8x8xbf16>
    %21 = vector.shape_cast %17 : vector<8x8xbf16> to vector<1x8x8xbf16>
    %22 = vector.shape_cast %18 : vector<8x8xbf16> to vector<1x8x8xbf16>
    %23 = tpu.concatenate %19, %20, %21, %22 in 0 : vector<1x8x8xbf16>, vector<1x8x8xbf16>, vector<1x8x8xbf16>, vector<1x8x8xbf16> -> vector<4x8x8xbf16>
    %24 = vector.extract_strided_slice %5 {offsets = [0, 64], sizes = [8, 8], strides = [1, 1]} : vector<8x128xbf16> to vector<8x8xbf16>
    %25 = vector.extract_strided_slice %5 {offsets = [0, 72], sizes = [8, 8], strides = [1, 1]} : vector<8x128xbf16> to vector<8x8xbf16>
    %26 = vector.extract_strided_slice %5 {offsets = [0, 80], sizes = [8, 8], strides = [1, 1]} : vector<8x128xbf16> to vector<8x8xbf16>
    %27 = vector.extract_strided_slice %5 {offsets = [0, 88], sizes = [8, 8], strides = [1, 1]} : vector<8x128xbf16> to vector<8x8xbf16>
    %28 = vector.shape_cast %24 : vector<8x8xbf16> to vector<1x8x8xbf16>
    %29 = vector.shape_cast %25 : vector<8x8xbf16> to vector<1x8x8xbf16>
    %30 = vector.shape_cast %26 : vector<8x8xbf16> to vector<1x8x8xbf16>
    %31 = vector.shape_cast %27 : vector<8x8xbf16> to vector<1x8x8xbf16>
    %32 = tpu.concatenate %28, %29, %30, %31 in 0 : vector<1x8x8xbf16>, vector<1x8x8xbf16>, vector<1x8x8xbf16>, vector<1x8x8xbf16> -> vector<4x8x8xbf16>
    "tpu.trace_start"() <{level = 10 : i32, message = "htd,hsd->hts"}> : () -> ()
    %cst_4 = arith.constant dense<0.000000e+00> : vector<4x8x8xf32>
    %33 = tpu.matmul %14, %23, %cst_4 {dimension_numbers = #tpu.dot_dimension_numbers<[2], [2], [1], [1], [0, 0, 0, 1, 1, 1], [0], [0]>} : vector<4x8x8xbf16>, vector<4x8x8xbf16>, vector<4x8x8xf32> -> vector<4x8x8xf32>
    "tpu.trace_stop"() : () -> ()
    %34 = tpu.iota {dimensions = array<i32: 0>} : vector<8x8xi32>
    %35 = tpu.iota {dimensions = array<i32: 1>} : vector<8x8xi32>
    %36 = arith.cmpi sle, %35, %34 : vector<8x8xi32>
    %37 = vector.shape_cast %36 : vector<8x8xi1> to vector<1x8x8xi1>
    %cst_5 = arith.constant -1.000000e+30 : f32
    %38 = vector.shape_cast %37 : vector<1x8x8xi1> to vector<1x8x8xi1>
    %39 = vector.broadcast %38 : vector<1x8x8xi1> to vector<4x8x8xi1>
    %40 = vector.broadcast %cst_5 : f32 to vector<4x8x8xf32>
    %41 = arith.select %39, %33, %40 : vector<4x8x8xi1>, vector<4x8x8xf32>
    %cst_6 = arith.constant dense<0xFF800000> : vector<4x8xf32>
    %42 = vector.multi_reduction <maximumf>, %41, %cst_6 [2] : vector<4x8x8xf32> to vector<4x8xf32>
    %43 = vector.shape_cast %42 : vector<4x8xf32> to vector<4x8x1xf32>
    %44 = vector.broadcast %43 : vector<4x8x1xf32> to vector<4x8x8xf32>
    %45 = arith.subf %41, %44 : vector<4x8x8xf32>
    %46 = math.exp %45 : vector<4x8x8xf32>
    %cst_7 = arith.constant dense<0.000000e+00> : vector<4x8xf32>
    %47 = vector.multi_reduction <add>, %46, %cst_7 [2] : vector<4x8x8xf32> to vector<4x8xf32>
    %48 = vector.shape_cast %47 : vector<4x8xf32> to vector<4x8x1xf32>
    %49 = tpu.reciprocal %48 {approx = true} : vector<4x8x1xf32> -> vector<4x8x1xf32>
    %50 = vector.broadcast %49 : vector<4x8x1xf32> to vector<4x8x8xf32>
    %51 = arith.mulf %46, %50 : vector<4x8x8xf32>
    %52 = arith.truncf %51 : vector<4x8x8xf32> to vector<4x8x8xbf16>
    "tpu.trace_start"() <{level = 10 : i32, message = "hts,hsd->htd"}> : () -> ()
    %cst_8 = arith.constant dense<0.000000e+00> : vector<4x8x8xf32>
    %53 = tpu.matmul %52, %32, %cst_8 {dimension_numbers = #tpu.dot_dimension_numbers<[2], [1], [1], [2], [0, 0, 0, 1, 1, 2], [0], [0]>} : vector<4x8x8xbf16>, vector<4x8x8xbf16>, vector<4x8x8xf32> -> vector<4x8x8xf32>
    "tpu.trace_stop"() : () -> ()
    %54 = arith.truncf %53 : vector<4x8x8xf32> to vector<4x8x8xbf16>
    %c0_9 = arith.constant 0 : index
    %c0_10 = arith.constant 0 : index
    %c0_11 = arith.constant 0 : index
    %55 = vector.load %arg3[%c0_9, %c0_10, %c0_11] : memref<4x8x128xbf16, #tpu.memory_space<vmem>>, vector<4x8x128xbf16>
    "tpu.trace_start"() <{level = 10 : i32, message = "htd,hdn->htn"}> : () -> ()
    %cst_12 = arith.constant dense<0.000000e+00> : vector<4x8x128xf32>
    %56 = tpu.matmul %54, %55, %cst_12 {dimension_numbers = #tpu.dot_dimension_numbers<[2], [1], [1], [2], [0, 0, 0, 1, 1, 2], [0], [0]>} : vector<4x8x8xbf16>, vector<4x8x128xbf16>, vector<4x8x128xf32> -> vector<4x8x128xf32>
    "tpu.trace_stop"() : () -> ()
    %cst_13 = arith.constant dense<0.000000e+00> : vector<8x128xf32>
    %57 = vector.multi_reduction <add>, %56, %cst_13 [0] : vector<4x8x128xf32> to vector<8x128xf32>
    %c0_14 = arith.constant 0 : index
    %c0_15 = arith.constant 0 : index
    %58 = vector.load %arg4[%c0_14, %c0_15] : memref<1x128xf32, #tpu.memory_space<vmem>>, vector<1x128xf32>
    %59 = vector.broadcast %58 : vector<1x128xf32> to vector<8x128xf32>
    %60 = arith.addf %57, %59 : vector<8x128xf32>
    %c0_16 = arith.constant 0 : index
    %c0_17 = arith.constant 0 : index
    %c0_18 = arith.constant 0 : index
    %61 = vector.load %arg5[%c0_16, %c0_17, %c0_18] : memref<1x8x128xf32, #tpu.memory_space<vmem>>, vector<1x8x128xf32>
    %62 = vector.shape_cast %61 : vector<1x8x128xf32> to vector<8x128xf32>
    %63 = vector.shape_cast %60 : vector<8x128xf32> to vector<1x8x128xf32>
    tpu.vector_store %arg5[%c0_16, %c0_17, %c0_18], %63 {strides = array<i32>} : memref<1x8x128xf32, #tpu.memory_space<vmem>>, vector<1x8x128xf32>,
    return
  }
  func.func @transform_0(%arg0: i32) -> (i32, i32, i32) {
    %c0_i32 = arith.constant 0 : i32
    %c0_i32_0 = arith.constant 0 : i32
    %c0_i32_1 = arith.constant 0 : i32
    return %arg0, %c0_i32, %c0_i32_0 : i32, i32, i32
  }
  func.func @transform_1(%arg0: i32) -> (i32, i32) {
    %c0_i32 = arith.constant 0 : i32
    %c0_i32_0 = arith.constant 0 : i32
    %c0_i32_1 = arith.constant 0 : i32
    return %c0_i32, %c0_i32_0 : i32, i32
  }
  func.func @transform_2(%arg0: i32) -> (i32, i32, i32) {
    %c0_i32 = arith.constant 0 : i32
    %c0_i32_0 = arith.constant 0 : i32
    %c0_i32_1 = arith.constant 0 : i32
    %c0_i32_2 = arith.constant 0 : i32
    return %c0_i32, %c0_i32_0, %c0_i32_1 : i32, i32, i32
  }
  func.func @transform_3(%arg0: i32) -> (i32, i32) {
    %c0_i32 = arith.constant 0 : i32
    %c0_i32_0 = arith.constant 0 : i32
    %c0_i32_1 = arith.constant 0 : i32
    return %c0_i32, %c0_i32_0 : i32, i32
  }
  func.func @transform_4(%arg0: i32) -> (i32, i32, i32) {
    %c0_i32 = arith.constant 0 : i32
    %c0_i32_0 = arith.constant 0 : i32
    %c0_i32_1 = arith.constant 0 : i32
    return %arg0, %c0_i32, %c0_i32_0 : i32, i32, i32
  }
}

</mosaic_0001>

<bundles_post_ra>
// kernel: tpu_custom_call.1
= control target key start
LH: loop header
LB: loop body
LE: loop exit
PB: predicated region body
PF: predicated region fallthrough
CT: control target
= control target key end

     0   :  { %9 = vsyncpa [#allocation3], 0  ;;  %s1562_s0 = inlined_call_operand.hbm [shape: f32[2,8,384], index: 0, kind: input, shape index: {}]   ;;  %s1563_s1 = inlined_call_operand.hbm [shape: bf16[384,128], index: 1, kind: input, shape index: {}]   ;;  %s1564_s2 = inlined_call_operand.hbm [shape: bf16[4,8,128], index: 2, kind: input, shape index: {}]   ;;  %s1565_s3 = inlined_call_operand.vmem [shape: f32[1,128], index: 3, kind: input, shape index: {}]   ;;  %s1566_s4 = inlined_call_operand.hbm [shape: f32[2,8,128], index: 4, kind: output, shape index: {}]  }
   0x1   :  { %11 = vsyncpa [#allocation3 + $0x1], 0 }
   0x2   :  { %12 = vsyncpa [#allocation6], 0 }
   0x3   :  { %13 = vsyncpa [#allocation4], 0 }
   0x4   :  { %15 = vsyncpa [#allocation4 + $0x1], 0  ;;  %s1366_s15 = smov 0   ;;  %s1368_s16 = smov 0  }
   0x5   :  { %s1370_s17 = smov 0   ;;  %s1372_s18 = smov 0  }
   0x6 LB: > { %s152_s21 = sshll.u32 %s1563_s1, 4  ;;  %s1390_s22 = sadd.s32 4294967295, %s1330_s18   ;;  %s1330_s18 = sphi %s1372_s18, %s1576_s18   ;;  %s1326_s17 = sphi %s1370_s17, %s1575_s17   ;;  %s1322_s16 = sphi %s1368_s16, %s1574_s16   ;;  %s1318_s15 = sphi %s1366_s15, %s1573_s15   ;;  %s153_s21 = int_to_ptr.hbm [resolvable:$true] %s152_s21 }
   0x7   : > { %p931_p0 = scmp.ge.s32.totalorder %s1330_s18, 1  ;;  %p42_p1 = scmp.eq.s32.totalorder %s1390_s22, 0 }
   0x8   : > { %p141_p2 = scmp.lt.s32.totalorder %s1330_s18, 3  ;;  %s1332_s24 = smov [#allocation5]  }
   0x9   : > { %s154_s25 = sshll.u32 %s1332_s24, 4  ;;  %s166_s28 = sshll.u32 %s1564_s2, 4  ;;  %s155_s25 = int_to_ptr.vmem [resolvable:$true] %s154_s25  ;;  %s167_s28 = int_to_ptr.hbm [resolvable:$true] %s166_s28 }
   0xa   : > { %p1395_p3 = pnand %p931_p0, %p141_p2  ;;  %s1333_s29 = smov [#allocation7]  }
   0xb   : > { %s168_s30 = sshll.u32 %s1333_s29, 4  ;;  %s1334_s5 = smov 64   ;;  %s169_s30 = int_to_ptr.vmem [resolvable:$true] %s168_s30 }
   0xc   : > { %p1091_p4 = pneg %p1395_p3  ;;  %s1335_s6 = smov 4  }
   0xd   : > { %s930_s7 = sadd.s32 4294967294, %s1330_s18   ;;  %s1409_s8 = sadd.s32 1, %s1330_s18  }
   0xe   : > { %p1092_p6 = pnand %p1091_p4, %p42_p1  ;;  %s25_s9 = ssub.s32 %s1330_s18, %s1409_s8 }
   0xf   : > { %s28_s10 = sadd.s32 1, %s1326_s17  ;;  %p26_p7 = scmp.eq.s32.totalorder %s25_s9, 0 }
  0x10   : > { %1094 = dma.hbm_to_vmem [thread:$0]  (!%p1092_p6), %s153_s21, 3072, %s155_s25, [#allocation6], %s1334_s5, %s1334_s5, %s1335_s6  }
  0x11   : > { %1097 = dma.hbm_to_vmem [thread:$0]  (!%p1092_p6), %s167_s28, 256, %s169_s30, [#allocation6], %s1334_s5, %s1334_s5, %s1335_s6  }
  0x12   : > { %p35_p8 = scmp.ne.s32.totalorder %s1326_s17, %s1322_s16  ;;  %p36_p9 = scmp.eq.s32.totalorder %s1330_s18, 0 }
  0x13   : > { %p41_p10 = scmp.ne.s32.totalorder %s1322_s16, %s1318_s15  ;;  %p128_p13 = scmp.eq.s32.totalorder %s1390_s22, 1 }
  0x14   : > { %s1420_s11 = scalar_select %p26_p7, %s1326_s17, %s28_s10  }
  0x15   : > { %p37_p11 = por %p36_p9, %p35_p8  ;;  %p1424_p12 = por %p42_p1, %p41_p10 }
  0x16   : > { %p134_p0 = scmp.eq.s32.totalorder %s930_s7, 1  ;;  %p1108_p2 = scmp.lt.s32.totalorder %s1330_s18, 2 }
  0x17   : > { %s185_s13 = sand.u32 1, %s1326_s17   ;;  %p1431_p4 = por %p128_p13, %p35_p8 }
  0x18   : > { %p1435_p6 = por %p134_p0, %p41_p10  ;;  %s1076_s20 = smul.u32 24, %s185_s13 }
  0x19   : > { %s1077_s21 = smul.u32 24, %s1330_s18  ;;  %p1440_p7 = pnand %p1108_p2, %p37_p11 }
  0x1a   : > { %s189_s28 = scalar_lea.vmem [#allocation2], %s1076_s20  ;;  %s186_s5 = scalar_lea.sflag [#allocation3], %s185_s13 }
  0x1b   : > { %s194_s27 = scalar_lea.hbm %s1562_s0, %s1077_s21  ;;  %s198_s29 = sshll.u32 %s189_s28, 4  ;;  %s199_s29 = int_to_ptr.vmem [resolvable:$true] %s198_s29 }
  0x1c   : > { %s196_s30 = sshll.u32 %s194_s27, 4  ;;  %p1234_p9 = pneg %p1440_p7  ;;  %s197_s30 = int_to_ptr.hbm [resolvable:$true] %s196_s30 }
  0x1d   : > { %s1230_s6 = sshra.s32 %s197_s30, 4  ;;  %s1237_s25 = scalar_lea.hbm %s1562_s0, 48  ;;  %s1231_s6 = int_to_ptr.hbm [resolvable:$true] %s1230_s6 }
  0x1e   : > { %s1232_s7 = scalar_lea.hbm %s1231_s6, 24  ;;  %p1238_p13 = scmp.lt.s32.totalorder %s1231_s6, %s1562_s0 }
  0x1f   : > { %p1233_p8 = scmp.ne.s32.totalorder %s1231_s6, %s1232_s7  ;;  %p1239_p0 = scmp.lt.s32.totalorder %s1237_s25, %s1232_s7 }
  0x21   : > { %p1235_p10 = pnand %p1234_p9, %p1233_p8  ;;  %p1240_p2 = por %p1239_p0, %p1238_p13 }
  0x23   : > { %p1236_p11 = pneg %p1235_p10 }
  0x25   : > { %p1241_p5 = pnand %p1240_p2, %p1236_p11 }
  0x27   : > { %1244 = shalt.err (!%p1241_p5)
}
  0x28   : > { %1101 = dma.hbm_to_vmem [thread:$0]  (!%p1440_p7), %s197_s30, 384, %s199_s29, %s186_s5  }
  0x29   : > { %207 = sbr.rel (%p1395_p3) target bundleno = 1140 (0x474), region = 36  ;;  %s1460_s13 = sand.u32 (!%p1395_p3), 1, %s1322_s16  }
  0x2a   : > { %s1078_s20 = smul.u32 (!%p1395_p3), 24, %s1460_s13  ;;  %s210_s27 = scalar_lea.sflag (!%p1395_p3), [#allocation3], %s1460_s13 }
  0x2c   : > { %s1464_s28 = scalar_lea.vmem (!%p1395_p3), [#allocation2], %s1078_s20 }
  0x2e   : > { %1305 = dma.done.wait (%p1424_p12), %s210_s27, 384  }
  0x2f   : > { %1307 = vsyncadd (%p1424_p12), %s210_s27, 4294966912 }
  0x30   : > { %1309 = dma.done.wait (%p42_p1), [#allocation6], 3328  }
  0x31   : > { %1311 = vsyncadd (%p42_p1), [#allocation6], 4294963968  ;;  %v1059_v0 = vld [vmem:[#allocation5 + $0x38] sm:$0xff]  ;;  %v1058_v3 = vld [vmem:[#allocation5 + $0x30] sm:$0xff]  ;;  %s1336_s23 = smov 120   ;;  %s1337_s12 = smov 96   ;;  %v588_v58 = vlaneseq }
  0x32   : > { %v1067_v1 = vld [vmem:[#allocation5 + $0x78] sm:$0xff]  ;;  %448 = vmatpush.bf16.msra.mxu0 %v1059_v0  ;;  %v1066_v4 = vld [vmem:[#allocation5 + $0x70] sm:$0xff]  ;;  %v1057_v6 = vld [vmem:[#allocation5 + $0x28] sm:$0xff]  ;;  %s1338_s24 = smov 112   ;;  %s1339_s29 = smov 104   ;;  %vm499_vm0 = vcmask 64512  }
  0x33   : > { %v1075_v2 = vld [vmem:[#allocation5 + $0xb8] sm:$0xff]  ;;  %461 = vmatpush.bf16.msra.mxu1 %v1067_v1  ;;  %v1074_v5 = vld [vmem:[#allocation5 + $0xb0] sm:$0xff]  ;;  %v1065_v7 = vld [vmem:[#allocation5 + $0x68] sm:$0xff]  ;;  %v589_v59 = vshrl.u32 %v588_v58, 7  ;;  %v591_v60 = vand.u32 127, %v588_v58  ;;  %s1340_s30 = smov 64  }
  0x34   : > { %474 = vmatpush.bf16.msra.mxu2 %v1075_v2  ;;  %v1073_v8 = vld [vmem:[#allocation5 + $0xa8] sm:$0xff]  ;;  %v1056_v9 = vld [vmem:[#allocation5 + $0x20] sm:$0xff]  ;;  %v1055_v12 = vld [vmem:[#allocation5 + $0x18] sm:$0xff]  ;;  %vm652_vm2 = vcmask 1043456   ;;  %s939_s5 = sshll.u32 %s1460_s13, 3  ;;  %s1049_s6 = sshll.u32 %s1390_s22, 3 }
  0x35   : > { %v1064_v10 = vld [vmem:[#allocation5 + $0x60] sm:$0xff]  ;;  %v1063_v13 = vld [vmem:[#allocation5 + $0x58] sm:$0xff]  ;;  %v1054_v15 = vld [vmem:[#allocation5 + $0x10] sm:$0xff]  ;;  %vm592_vm1 = vcmp.le.s32.totalorder %v591_v60, %v589_v59  ;;  %s836_s10 = scalar_lea.hbm %s1566_s4, %s1049_s6  ;;  %s248_s21 = scalar_lea.vmem [#allocation8], %s939_s5 }
  0x36   : > { %449 = vmatpush.bf16.msra.mxu0 %v1058_v3  ;;  %v1072_v11 = vld [vmem:[#allocation5 + $0xa0] sm:$0xff]  ;;  %v1071_v14 = vld [vmem:[#allocation5 + $0x98] sm:$0xff]  ;;  %v1062_v16 = vld [vmem:[#allocation5 + $0x50] sm:$0xff]  ;;  %s838_s20 = sshll.u32 %s248_s21, 4  ;;  %s840_s27 = sshll.u32 %s836_s10, 4  ;;  %s839_s20 = int_to_ptr.vmem [resolvable:$true] %s838_s20  ;;  %s841_s27 = int_to_ptr.hbm [resolvable:$true] %s840_s27 }
  0x37   : > { %462 = vmatpush.bf16.msra.mxu1 %v1066_v4  ;;  %v1070_v17 = vld [vmem:[#allocation5 + $0x90] sm:$0xff]  ;;  %v1053_v18 = vld [vmem:[#allocation5 + $0x8] sm:$0xff]  ;;  %v1052_v21 = vld [vmem:[#allocation5] sm:$0xff]  ;;  %s826_s22 = scalar_lea.sflag [#allocation4], %s1460_s13 }
  0x38   : > { %475 = vmatpush.bf16.msra.mxu2 %v1074_v5  ;;  %v1061_v19 = vld [vmem:[#allocation5 + $0x48] sm:$0xff]  ;;  %v1060_v22 = vld [vmem:[#allocation5 + $0x40] sm:$0xff]  ;;  %v251_v24 = vld [vmem:[%s1464_s28 + $0x8] sm:$0xff] }
  0x39   : > { %v1069_v20 = vld [vmem:[#allocation5 + $0x88] sm:$0xff]  ;;  %v1068_v25 = vld [vmem:[#allocation5 + $0x80] sm:$0xff]  ;;  %v254_v28 = vpack.c.bf16 %v251_v24, %v251_v24 }
  0x3a   : > { %450 = vmatpush.bf16.msra.mxu0 %v1057_v6  ;;  %v250_v23 = vld [vmem:[%s1464_s28] sm:$0xff]  ;;  %v252_v26 = vld [vmem:[%s1464_s28 + $0x10] sm:$0xff]  ;;  %s1274_s28 = sshra.s32 %s841_s27, 4  ;;  %s1275_s28 = int_to_ptr.hbm [resolvable:$true] %s1274_s28 }
  0x3b   : > { %463 = vmatpush.bf16.msra.mxu1 %v1065_v7  ;;  %v253_v27 = vpack.c.bf16 %v250_v23, %v250_v23  ;;  %v255_v29 = vpack.c.bf16 %v252_v26, %v252_v26  ;;  %p1281_p12 = scmp.lt.s32.totalorder %s1275_s28, %s1566_s4 }
  0x3c   : > { %476 = vmatpush.bf16.msra.mxu2 %v1073_v8 }
  0x3e   : > { %451 = vmatpush.bf16.msra.mxu0 %v1056_v9 }
  0x3f   : > { %464 = vmatpush.bf16.msra.mxu1 %v1064_v10 }
  0x40   : > { %477 = vmatpush.bf16.msra.mxu2 %v1072_v11 }
  0x42   : > { %452 = vmatpush.bf16.msra.mxu0 %v1055_v12 }
  0x43   : > { %465 = vmatpush.bf16.msra.mxu1 %v1063_v13 }
  0x44   : > { %478 = vmatpush.bf16.msra.mxu2 %v1071_v14 }
  0x46   : > { %453 = vmatpush.bf16.msra.mxu0 %v1054_v15 }
  0x47   : > { %466 = vmatpush.bf16.msra.mxu1 %v1062_v16 }
  0x48   : > { %479 = vmatpush.bf16.msra.mxu2 %v1070_v17 }
  0x4a   : > { %454 = vmatpush.bf16.msra.mxu0 %v1053_v18 }
  0x4b   : > { %467 = vmatpush.bf16.msra.mxu1 %v1061_v19 }
  0x4c   : > { %480 = vmatpush.bf16.msra.mxu2 %v1069_v20 }
  0x4e   : > { %455 = vmatpush.bf16.msra.mxu0 %v1052_v21 }
  0x4f   : > { %468 = vmatpush.bf16.msra.mxu1 %v1060_v22 }
  0x50   : > { %481 = vmatpush.bf16.msra.mxu2 %v1068_v25 }
  0x51   : > { %456 = vmatmul.bf16.vlgmr.msra.gmra.mxu0 %v253_v27 }
  0x52   : > { %469 = vmatmul.bf16.vlgmr.msra.gmra.mxu1 %v254_v28 }
  0x53   : > { %482 = vmatmul.bf16.vlgmr.msra.gmra.mxu2 %v255_v29 }
  0xce   : > { %v457_v30 = vpop.f32.mrf.mxu0 }
  0xcf   : > { %v470_v31 = vpop.f32.mrf.mxu1 }
  0xd0   : > { %v471_v32 = vadd.f32 %v470_v31, %v457_v30 }
  0xd6   : > { %v483_v33 = vpop.f32.mrf.mxu2  ;;  %v459_v35 = vpop.f32.mrf.mxu0 }
  0xd7   : > { %v484_v34 = vadd.f32 %v483_v33, %v471_v32  ;;  %v472_v36 = vpop.f32.mrf.mxu1 }
  0xd9   : > { %v487_v37 = vpack.c.bf16 %v484_v34, %v484_v34 }
  0xdb   : > { %489 = vrot.lane.b32.xlu0 %v487_v37, %s1336_s23  ;;  %v495_v38 = vunpack.c.l.b16 %v487_v37  ;;  %s1276_s23 = scalar_lea.hbm %s1275_s28, 8 }
  0xdc   : > { %p1277_p1 = scmp.ne.s32.totalorder %s1275_s28, %s1276_s23 }
  0xdd   : > { %v496_v39 = vpack.c.b16 %v495_v38, %v495_v38 }
  0xde   : > { %v485_v40 = vpop.f32.mrf.mxu2  ;;  %p1278_p3 = pnand %p1277_p1, %p1431_p4 }
  0xdf   : > { %497 = vrot.lane.b32.xlu1 %v496_v39, %s1337_s12 }
  0xe0   : > { %p1279_p5 = pneg %p1278_p3 }
  0xe3   : > { %491 = vrot.lane.b32.xlu0 %v487_v37, %s1338_s24 }
  0xe7   : > { %493 = vrot.lane.b32.xlu1 %v487_v37, %s1339_s29  ;;  %s1280_s29 = scalar_lea.hbm %s1566_s4, 16 }
  0xe8   : > { %p1282_p7 = scmp.lt.s32.totalorder %s1280_s29, %s1276_s23 }
  0xea   : > { %p1283_p8 = por %p1282_p7, %p1281_p12 }
  0xec   : > { %p1284_p9 = pnand %p1283_p8, %p1279_p5 }
 0x14d   : > { %v490_v41 = vpop.permute.xlu0 %489 }
 0x14e   : > { %v519_v42 = vunpack.c.l.b16 %v490_v41 }
 0x150   : > { %v520_v43 = vpack.c.b16 %v519_v42, %v519_v42 }
 0x151   : > { %v498_v44 = vpop.permute.xlu1 %497 }
 0x152   : > { %521 = vrot.lane.b32.xlu2 %v520_v43, %s1337_s12  ;;  %v504_v45 = vsel %vm499_vm0, %v498_v44, 0 }
 0x153   : > { %513 = vmatpush.bf16.xpose.msra.mxu3 %v504_v45  ;;  %v736_v45 = vld [vmem:[#allocation7] sm:$0xf] }
 0x155   : > { %v492_v46 = vpop.permute.xlu0 %491 }
 0x156   : > { %v542_v47 = vunpack.c.l.b16 %v492_v46 }
 0x158   : > { %v1478_v48 = vpack.c.b16 %v542_v47, %v542_v47 }
 0x159   : > { %v494_v49 = vpop.permute.xlu1 %493 }
 0x15a   : > { %v565_v50 = vunpack.c.l.b16 %v494_v49  ;;  %544 = vrot.lane.b32.xlu2 %v1478_v48, %s1337_s12  ;;  %1036 = vmatmul.msk.bf16.vlgmr.msra.gmra.mxu3 %vm499_vm0, %v487_v37 }
 0x15c   : > { %v1482_v51 = vpack.c.b16 %v565_v50, %v565_v50 }
 0x15e   : > { %567 = vrot.lane.b32.xlu0 %v1482_v51, %s1337_s12 }
 0x1ac   : > { %v522_v52 = vpop.permute.xlu2 %521 }
 0x1ad   : > { %v527_v53 = vsel %vm499_vm0, %v522_v52, 0 }
 0x1ae   : > { %536 = vmatpush.bf16.xpose.msrb.mxu3 %v527_v53 }
 0x1b4   : > { %v545_v54 = vpop.permute.xlu2 %544 }
 0x1b5   : > { %v550_v55 = vsel %vm499_vm0, %v545_v54, 0  ;;  %1037 = vmatmul.msk.bf16.vlgmr.msrb.gmra.mxu3 %vm499_vm0, %v490_v41 }
 0x1b6   : > { %559 = vmatpush.bf16.xpose.msra.mxu3 %v550_v55 }
 0x1c5   : > { %1038 = vmatmul.msk.bf16.vlgmr.msra.gmra.mxu3 %vm499_vm0, %v492_v46  ;;  %v744_v46 = vsel %vm652_vm2, %v736_v45, 0 }
 0x1d0   : > { %v568_v56 = vpop.permute.xlu0 %567 }
 0x1d1   : > { %v573_v57 = vsel %vm499_vm0, %v568_v56, 0 }
 0x1d2   : > { %582 = vmatpush.bf16.xpose.msrb.mxu0 %v573_v57 }
 0x1d9   : > { %1039 = vmatmul.msk.bf16.vlgmr.msrb.gmra.mxu0 %vm499_vm0, %v494_v49 }
 0x1dd   : > { %v515_v61 = vpop.f32.mrf.mxu3 }
 0x1de   : > { %v595_v62 = vsel %vm592_vm1, %v515_v61, -1e+30 }
 0x1df   : > { %v599_v63 = vsel %vm499_vm0, %v595_v62, -inf }
 0x1e0   : > { %600 = vmax.xlane.f32.xlu0 %v599_v63 }
 0x1e5   : > { %v517_v0 = vpop.f32.mrf.mxu3 }
 0x1e6   : > { %v739_v0 = vld [vmem:[#allocation7 + $0xc] sm:$0xf] }
 0x1f4   : > { %669 = vrot.lane.b32.xlu0 %v520_v43, %s1340_s30 }
 0x1fc   : > { %647 = vrot.lane.b32.xlu0 %v496_v39, %s1340_s30 }
 0x238   : > { %v538_v1 = vpop.f32.mrf.mxu3 }
 0x239   : > { %v596_v2 = vsel %vm592_vm1, %v538_v1, -1e+30 }
 0x23a   : > { %v602_v3 = vsel %vm499_vm0, %v596_v2, -inf }
 0x23b   : > { %603 = vmax.xlane.f32.xlu1 %v602_v3 }
 0x240   : > { %v540_v4 = vpop.f32.mrf.mxu3 }
 0x241   : > { %v738_v4 = vld [vmem:[#allocation7 + $0x8] sm:$0xf] }
 0x248   : > { %v561_v5 = vpop.f32.mrf.mxu3 }
 0x249   : > { %v597_v6 = vsel %vm592_vm1, %v561_v5, -1e+30  ;;  %v782_v5 = vsel %vm652_vm2, %v738_v4, 0 }
 0x24a   : > { %v605_v7 = vsel %vm499_vm0, %v597_v6, -inf }
 0x24b   : > { %606 = vmax.xlane.f32.xlu2 %v605_v7 }
 0x250   : > { %v563_v8 = vpop.f32.mrf.mxu3 }
 0x253   : > { %v601_v9 = vpop.xlane.xlu0 %600 }
 0x254   : > { %v611_v10 = vsub.f32 %v595_v62, %v601_v9  ;;  %v737_v62 = vld [vmem:[#allocation7 + $0x4] sm:$0xf] }
 0x255   : > { %v763_v63 = vsel %vm652_vm2, %v737_v62, 0 }
 0x256   : > { %v615_v11 = vmul.f32 1.442695, %v611_v10  ;;  %v584_v12 = vpop.f32.mrf.mxu0 }
 0x257   : > { %v598_v13 = vsel %vm592_vm1, %v584_v12, -1e+30 }
 0x258   : > { %1154 = vpow2.f32 %v615_v11  ;;  %v608_v14 = vsel %vm499_vm0, %v598_v13, -inf }
 0x259   : > { %609 = vmax.xlane.f32.xlu2 %v608_v14 }
 0x25e   : > { %v1155_v15 = vpop.eup %1154  ;;  %v586_v16 = vpop.f32.mrf.mxu0 }
 0x25f   : > { %v623_v17 = vsel %vm499_vm0, %v1155_v15, 0.0 }
 0x261   : > { %624 = vadd.xlane.f32.xlu2 %v623_v17 }
 0x266   : > { %v670_v18 = vpop.permute.xlu0 %669 }
 0x267   : > { %v675_v19 = vsel %vm652_vm2, %v670_v18, 0 }
 0x268   : > { %684 = vmatpush.bf16.msrb.mxu2 %v675_v19 }
 0x26c   : > { %772 = vmatpush.bf16.msra.mxu2 %v763_v63 }
 0x26e   : > { %v648_v20 = vpop.permute.xlu0 %647 }
 0x26f   : > { %v654_v21 = vsel %vm652_vm2, %v648_v20, 0 }
 0x270   : > { %663 = vmatpush.bf16.msrb.mxu1 %v654_v21 }
 0x274   : > { %753 = vmatpush.bf16.msra.mxu1 %v744_v46 }
 0x2ae   : > { %v604_v22 = vpop.xlane.xlu1 %603 }
 0x2af   : > { %v612_v23 = vsub.f32 %v596_v2, %v604_v22  ;;  %v801_v2 = vsel %vm652_vm2, %v739_v0, 0  ;;  %v1153_v22 = vld [vmem:[%s1565_s3] ss:$0 sm:$0xff] }
 0x2b1   : > { %v617_v24 = vmul.f32 1.442695, %v612_v23 }
 0x2b3   : > { %1156 = vpow2.f32 %v617_v24 }
 0x2b9   : > { %v1157_v25 = vpop.eup %1156 }
 0x2ba   : > { %v626_v26 = vsel %vm499_vm0, %v1157_v25, 0.0 }
 0x2bb   : > { %627 = vadd.xlane.f32.xlu1 %v626_v26 }
 0x2be   : > { %v607_v27 = vpop.xlane.xlu2 %606 }
 0x2bf   : > { %v613_v30 = vsub.f32 %v597_v6, %v607_v27 }
 0x2c1   : > { %v619_v32 = vmul.f32 1.442695, %v613_v30 }
 0x2cc   : > { %v610_v28 = vpop.xlane.xlu2 %609 }
 0x2cd   : > { %v614_v29 = vsub.f32 %v598_v13, %v610_v28 }
 0x2cf   : > { %v621_v31 = vmul.f32 1.442695, %v614_v29 }
 0x2d1   : > { %1158 = vpow2.f32 %v621_v31 }
 0x2d4   : > { %690 = vrot.lane.b32.xlu1 %v1478_v48, %s1340_s30  ;;  %v625_v33 = vpop.xlane.xlu2 %624 }
 0x2d5   : > { %1160 = vrcp.f32 %v625_v33 }
 0x2d6   : > { %1162 = vpow2.f32 %v619_v32 }
 0x2d7   : > { %v1159_v34 = vpop.eup %1158 }
 0x2d8   : > { %v632_v35 = vsel %vm499_vm0, %v1159_v34, 0.0 }
 0x2d9   : > { %633 = vadd.xlane.f32.xlu2 %v632_v35 }
 0x2db   : > { %v1161_v36 = vpop.eup %1160 }
 0x2dc   : > { %v639_v37 = vmul.f32 %v1161_v36, %v1155_v15  ;;  %v1163_v38 = vpop.eup %1162 }
 0x2dd   : > { %v629_v40 = vsel %vm499_vm0, %v1163_v38, 0.0 }
 0x2de   : > { %v643_v39 = vpack.c.bf16 %v639_v37, %v639_v37 }
 0x2e0   : > { %1040 = vmatmul.msk.bf16.vlgmr.msrb.gmra.mxu1 %vm499_vm0, %v643_v39 }
 0x2e1   : > { %630 = vadd.xlane.f32.xlu2 %v629_v40 }
 0x2f9   : > { %711 = vrot.lane.b32.xlu2 %v1482_v51, %s1340_s30 }
 0x32e   : > { %v628_v41 = vpop.xlane.xlu1 %627 }
 0x32f   : > { %1164 = vrcp.f32 %v628_v41 }
 0x335   : > { %v1165_v42 = vpop.eup %1164 }
 0x336   : > { %v640_v43 = vmul.f32 %v1165_v42, %v1157_v25 }
 0x338   : > { %v644_v44 = vpack.c.bf16 %v640_v43, %v640_v43 }
 0x33a   : > { %1041 = vmatmul.msk.bf16.vlgmr.msrb.gmra.mxu2 %vm499_vm0, %v644_v44 }
 0x346   : > { %v691_v47 = vpop.permute.xlu1 %690 }
 0x347   : > { %v696_v48 = vsel %vm652_vm2, %v691_v47, 0 }
 0x348   : > { %705 = vmatpush.bf16.msrb.mxu3 %v696_v48 }
 0x34c   : > { %v634_v49 = vpop.xlane.xlu2 %633  ;;  %791 = vmatpush.bf16.msra.mxu3 %v782_v5 }
 0x34d   : > { %1166 = vrcp.f32 %v634_v49 }
 0x353   : > { %v1167_v51 = vpop.eup %1166 }
 0x354   : > { %v631_v50 = vpop.xlane.xlu2 %630  ;;  %v642_v53 = vmul.f32 %v1167_v51, %v1159_v34 }
 0x355   : > { %1168 = vrcp.f32 %v631_v50 }
 0x356   : > { %v646_v60 = vpack.c.bf16 %v642_v53, %v642_v53 }
 0x35b   : > { %v1169_v52 = vpop.eup %1168 }
 0x35c   : > { %v641_v54 = vmul.f32 %v1169_v52, %v1163_v38  ;;  %v712_v55 = vpop.permute.xlu2 %711 }
 0x35d   : > { %v717_v56 = vsel %vm652_vm2, %v712_v55, 0  ;;  %v665_v57 = vpop.f32.mrf.mxu1 }
 0x35e   : > { %v645_v58 = vpack.c.bf16 %v641_v54, %v641_v54  ;;  %v732_v59 = vpack.c.bf16 %v665_v57, %v665_v57  ;;  %726 = vmatpush.bf16.msra.mxu0 %v717_v56 }
 0x360   : > { %1042 = vmatmul.msk.bf16.vlgmr.msrb.gmra.mxu3 %vm499_vm0, %v645_v58  ;;  %1044 = vmatmul.msk.bf16.vlgmr.msra.gmra.mxu1 %vm499_vm0, %v732_v59 }
 0x361   : > { %1043 = vmatmul.msk.bf16.vlgmr.msra.gmra.mxu0 %vm499_vm0, %v646_v60 }
 0x362   : > { %810 = vmatpush.bf16.msrb.mxu0 %v801_v2 }
 0x365   : > { %v667_v61 = vpop.f32.mrf.mxu1 }
 0x3bd   : > { %v686_v1 = vpop.f32.mrf.mxu2 }
 0x3be   : > { %v733_v3 = vpack.c.bf16 %v686_v1, %v686_v1 }
 0x3c0   : > { %1045 = vmatmul.msk.bf16.vlgmr.msra.gmra.mxu2 %vm499_vm0, %v733_v3 }
 0x3c5   : > { %v688_v6 = vpop.f32.mrf.mxu2 }
 0x3dd   : > { %v755_v7 = vpop.f32.mrf.mxu1 }
 0x3de   : > { %v728_v8 = vpop.f32.mrf.mxu0 }
 0x3df   : > { %v735_v9 = vpack.c.bf16 %v728_v8, %v728_v8 }
 0x3e1   : > { %1047 = vmatmul.msk.bf16.vlgmr.msrb.gmra.mxu0 %vm499_vm0, %v735_v9 }
 0x3e3   : > { %v707_v10 = vpop.f32.mrf.mxu3 }
 0x3e4   : > { %v734_v11 = vpack.c.bf16 %v707_v10, %v707_v10 }
 0x3e5   : > { %v757_v12 = vpop.f32.mrf.mxu1 }
 0x3e6   : > { %v730_v13 = vpop.f32.mrf.mxu0  ;;  %1046 = vmatmul.msk.bf16.vlgmr.msra.gmra.mxu3 %vm499_vm0, %v734_v11 }
 0x3eb   : > { %v709_v14 = vpop.f32.mrf.mxu3 }
 0x443   : > { %v774_v15 = vpop.f32.mrf.mxu2 }
 0x444   : > { %v816_v19 = vadd.f32 %v774_v15, %v755_v7 }
 0x44b   : > { %v776_v16 = vpop.f32.mrf.mxu2 }
 0x45e   : > { %v812_v17 = vpop.f32.mrf.mxu0 }
 0x466   : > { %v814_v18 = vpop.f32.mrf.mxu0 }
 0x469   : > { %v793_v20 = vpop.f32.mrf.mxu3 }
 0x46a   : > { %v817_v21 = vadd.f32 %v816_v19, %v793_v20 }
 0x46c   : > { %v818_v23 = vadd.f32 %v817_v21, %v812_v17 }
 0x46e   : > { %v823_v24 = vadd.f32 %v1153_v22, %v818_v23 }
 0x470   : > { %824 = vst [vmem:[%s248_s21] sm:$0xff] %v823_v24 }
 0x471   : > { %v795_v25 = vpop.f32.mrf.mxu3 }
 0x472   : > { %1287 = shalt.err (!%p1284_p9)
}
 0x473   : > { %1089 = dma.vmem_to_hbm [thread:$0]  (%p1431_p4), %s839_s20, 128, %s841_s27, %s826_s22  }
 0x474 PF: > { %s852_s13 = sand.u32 1, %s1318_s15   ;;  %p1572_p10 = scmp.ge.s32.totalorder %s1330_s18, 2 }
 0x475   : > { %s853_s6 = scalar_lea.sflag [#allocation4], %s852_s13 }
 0x476   : > { %p1103_p11 = pnand %p1572_p10, %p1435_p6 }
 0x478   : > { %p1104_p13 = pneg %p1103_p11 }
 0x47a   : > { %1313 = dma.done.wait (%p1104_p13), %s853_s6, 128  }
 0x47b   : > { %1315 = vsyncadd (%p1104_p13), %s853_s6, 4294967168  ;;  %p18_p0 = scmp.ge.s32.totalorder %s1409_s8, 4   ;;  %s1573_s15 = smov %s1322_s16 }
 0x47c   : > { %s1574_s16 = smov %s1326_s17  ;;  %s1575_s17 = smov %s1420_s11 }
 0x47d   : > { %s1576_s18 = smov %s1409_s8  ;;  %20 = sbr.rel (!%p18_p0) target bundleno = 6 (0x6), region = 89 }
 0x482   :  { %859 = vsyncpa [#allocation3], 1 }
 0x483   :  { %861 = vsyncpa [#allocation3 + $0x1], 1 }
 0x484   :  { %862 = vsyncpa [#allocation6], 1 }
 0x485   :  { %863 = vsyncpa [#allocation4], 1 }
 0x486   :  { %865 = vsyncpa [#allocation4 + $0x1], 1 }

</bundles_post_ra>
